<compile_context>
chip_gen: v5e
topology: v5e:2x2
jax: 0.10.0
libtpu: 0.0.40
codegen_flags: <defaults>
</compile_context>

<pallas_src>
import functools

import jax
import jax.numpy as jnp
from jax import lax
from jax.experimental import pallas as pl
from jax.experimental.pallas import tpu as pltpu


def _vmem_capacity_bytes():
    """Per-core VMEM capacity; conservative 64 MiB fallback (v7x)."""
    try:
        v = int(pltpu.get_tpu_info().vmem_capacity_bytes)
        if v > 0:
            return v
    except Exception:
        pass
    return 64 << 20


def _num_tensorcores():
    """Defensive TensorCore-count query; defaults to 1 (always safe)."""
    try:
        info = pltpu.get_tpu_info()
        for name in ("num_cores", "core_count", "num_tensorcores", "tensorcores"):
            v = getattr(info, name, None)
            if isinstance(v, int) and v >= 1:
                return v
    except Exception:
        pass
    return 1


def _complex_mse_kernel(est_ref, lab_ref, out_ref, *, tile_rows, ntpc, rows,
                        need_mask):
    """Accumulate sum((est - lab)^2) for this core's row-tiles.

    Grid = (ncore, n_tiles_per_core); axis 1 is the reduction axis (last).
    The output block's index_map ignores axis 1, so out_ref stays VMEM-resident
    across the reduction and acts as an (8, lane) f32 accumulator.
    """
    j = pl.program_id(1)

    @pl.when(j == 0)
    def _():
        out_ref[...] = jnp.zeros_like(out_ref)

    # Cast inside VMEM; HBM reads stay in the input dtype.
    d = est_ref[...].astype(jnp.float32) - lab_ref[...].astype(jnp.float32)
    sq = d * d

    if need_mask:
        # Zero rows past the end of the real array (ragged last tile, and any
        # clamped duplicate tiles on the trailing core).  Mask is computed from
        # the *logical* global row index, so clamped blocks contribute nothing.
        c = pl.program_id(0)
        row0 = (c * ntpc + j) * tile_rows
        rid = row0 + lax.broadcasted_iota(jnp.int32, (tile_rows, 1), 0)
        sq = jnp.where(rid < rows, sq, 0.0)

    lane = sq.shape[-1]
    # Fold the (tile_rows, lane) tile onto the (8, lane) accumulator.  The
    # split of the sublane-major axis is layout-preserving and the sum over the
    # leading axis lowers to plain vreg adds (VPU only, no cross-lane work).
    out_ref[...] += jnp.sum(sq.reshape(tile_rows // 8, 8, lane), axis=0)


def complex_mse_loss(csi_est, csi_label, *, tile_bytes_target=None):
    """Pallas implementation of ComplexMSELoss.forward.

    csi_est, csi_label: (B, M, 2) arrays (last axis = [real, imag]).
    Returns a scalar float32 loss = mean over (B, M) of |est - label|^2.
    """
    assert csi_est.shape == csi_label.shape
    assert csi_est.shape[-1] == 2
    b, m = csi_est.shape[0], csi_est.shape[1]
    n_complex = b * m
    n_elems = n_complex * 2

    est = csi_est.reshape(-1)
    lab = csi_label.reshape(-1)

    # Lane width: prefer 512/1024 (full DMA efficiency, small accumulator vreg
    # footprint).  Fall back to 128 with a JAX-summed tail if nothing divides.
    lane = None
    for cand in (512, 1024, 256, 128):
        if n_elems % cand == 0:
            lane = cand
            break
    if lane is None:
        lane = 128
    n_main = (n_elems // lane) * lane

    itemsize = max(est.dtype.itemsize, lab.dtype.itemsize)
    min_itemsize = min(est.dtype.itemsize, lab.dtype.itemsize)
    sub = 8 * max(1, 4 // min_itemsize)       # 8 (f32) / 16 (bf16) / 32 (8-bit)
    rows = n_main // lane

    if rows < sub:
        # Tiny input: a kernel launch would be pure overhead.
        d = est.astype(jnp.float32) - lab.astype(jnp.float32)
        return jnp.sum(d * d) / jnp.float32(n_complex)

    # Main (kernel) part + tiny tail (plain JAX, < lane elements).  No jnp.pad:
    # padding would re-read and re-write both full tensors in HBM.
    if n_main == n_elems:
        est_main = est.reshape(rows, lane)
        lab_main = lab.reshape(rows, lane)
        tail_sum = jnp.float32(0.0)
    else:
        est_main = est[:n_main].reshape(rows, lane)
        lab_main = lab[:n_main].reshape(rows, lane)
        dt = est[n_main:].astype(jnp.float32) - lab[n_main:].astype(jnp.float32)
        tail_sum = jnp.sum(dt * dt)

    # --- VMEM-aware tile sizing (pure HBM-bound kernel: big tiles amortize the
    # ~0.35 us per-grid-step overhead; budget 2 inputs x 2 buffers + slack). ---
    cap = _vmem_capacity_bytes()
    if tile_bytes_target is None:
        tile_bytes_target = (8 << 20) if cap <= (64 << 20) else (16 << 20)
    budget = (cap * 3) // 4
    per_input_cap = max(64 * 1024, (budget - (4 << 20)) // 4)
    tile_bytes = max(lane * sub * itemsize, min(tile_bytes_target, per_input_cap))
    tile_rows = max(sub, (tile_bytes // (lane * itemsize)) // sub * sub)
    tile_rows = min(tile_rows, (rows // sub) * sub)

    n_tiles = pl.cdiv(rows, tile_rows)

    ncore = _num_tensorcores()
    if ncore > 1 and n_tiles < 2 * ncore:
        ncore = 1                      # not worth splitting / single-TC chips
    ntpc = pl.cdiv(n_tiles, ncore)

    need_mask = (rows % tile_rows != 0) or (ncore * ntpc != n_tiles)

    if ncore == 1:
        in_index = lambda c, j: (j, 0)
        dims = ("arbitrary", "arbitrary")
    else:
        last_tile = n_tiles - 1
        # Clamp so block indices are always in bounds; the in-kernel mask
        # zeroes the (duplicate) clamped tiles.
        in_index = lambda c, j: (jnp.minimum(c * ntpc + j, last_tile), 0)
        dims = (getattr(pltpu, "CORE_PARALLEL", "parallel"),
                getattr(pltpu, "ARBITRARY", "arbitrary"))
    out_index = lambda c, j: (c, 0)

    tile_in_bytes = tile_rows * lane * (est.dtype.itemsize + lab.dtype.itemsize)
    vmem_limit = int(min(cap, max(16 << 20, 2 * tile_in_bytes + (8 << 20))))

    kernel = functools.partial(
        _complex_mse_kernel,
        tile_rows=tile_rows, ntpc=ntpc, rows=rows, need_mask=need_mask)

    partial_sums = pl.pallas_call(
        kernel,
        out_shape=jax.ShapeDtypeStruct((ncore * 8, lane), jnp.float32),
        grid_spec=pltpu.PrefetchScalarGridSpec(
            num_scalar_prefetch=0,
            grid=(ncore, ntpc),
            in_specs=[pl.BlockSpec((tile_rows, lane), in_index),
                      pl.BlockSpec((tile_rows, lane), in_index)],
            out_specs=pl.BlockSpec((8, lane), out_index),
        ),
        compiler_params=pltpu.CompilerParams(
            dimension_semantics=dims,
            vmem_limit_bytes=vmem_limit,
        ),
    )(est_main, lab_main)

    # Tiny (<= 16 x 1024 f32) cross-lane reduction once, outside the kernel.
    return (jnp.sum(partial_sums) + tail_sum) / jnp.float32(n_complex)


def _reference_loss(csi_est, csi_label):
    diff = csi_est.astype(jnp.float32) - csi_label.astype(jnp.float32)
    mag = jnp.sqrt(jnp.square(diff[..., 0]) + jnp.square(diff[..., 1]))
    return jnp.mean(jnp.square(mag))


if __name__ == "__main__":
    key = jax.random.PRNGKey(0)

    # (B, M) cases:
    #  (2, 2048): clean path (lane=512, rows=16, one full tile, no mask)
    #  (2, 1440) w/ tiny tile target: multi-tile grid + ragged-last-tile mask
    #  (2, 612):  flat length not a multiple of 128 -> kernel main + JAX tail
    #  (2, 100):  tiny input -> plain-JAX fast path
    cases = [((2, 2048), None), ((2, 1440), 4096), ((2, 612), None),
             ((2, 100), None)]
    for (bb, mm), tbt in cases:
        key, k1, k2 = jax.random.split(key, 3)
        csi_est = jax.random.normal(k1, (bb, mm, 2), dtype=jnp.float32)
        csi_label = jax.random.normal(k2, (bb, mm, 2), dtype=jnp.float32)

        if tbt is None:
            loss = complex_mse_loss(csi_est, csi_label)
        else:
            loss = complex_mse_loss(csi_est, csi_label, tile_bytes_target=tbt)
        loss = jax.block_until_ready(loss)
        ref = jax.block_until_ready(_reference_loss(csi_est, csi_label))
        assert jnp.allclose(loss, ref, rtol=1e-5, atol=1e-6), (
            (bb, mm), loss, ref)

    print("KERNEL_OK")
</pallas_src>

<mosaic_0001>
module attributes {stable_mosaic.version = 11 : i64} {
  func.func @_complex_mse_kernel(%arg0: i32, %arg1: i32, %arg2: memref<16x512xf32, #tpu.memory_space<vmem>>, %arg3: memref<16x512xf32, #tpu.memory_space<vmem>>, %arg4: memref<8x512xf32, #tpu.memory_space<vmem>>) attributes {dimension_semantics = [#tpu.dimension_semantics<arbitrary>, #tpu.dimension_semantics<arbitrary>], iteration_bounds = array<i64: 1, 1>, scalar_prefetch = 0 : i64, scratch_operands = 0 : i64, tpu.core_type = #tpu.core_type<tc>, window_params = [{transform_indices = @transform_0, window_bounds = array<i64: 16, 512>}, {transform_indices = @transform_1, window_bounds = array<i64: 16, 512>}, {transform_indices = @transform_2, window_bounds = array<i64: 8, 512>}]} {
    %c0_i32 = arith.constant 0 : i32
    %0 = arith.cmpi eq, %arg1, %c0_i32 : i32
    %1 = arith.extui %0 : i1 to i32
    %c0_i32_0 = arith.constant 0 : i32
    %2 = arith.cmpi ne, %1, %c0_i32_0 : i32
    scf.if %2 {
      %cst_8 = arith.constant 0.000000e+00 : f32
      %12 = vector.broadcast %cst_8 : f32 to vector<8x512xf32>
      %c0_9 = arith.constant 0 : index
      %c0_10 = arith.constant 0 : index
      %13 = vector.load %arg4[%c0_9, %c0_10] : memref<8x512xf32, #tpu.memory_space<vmem>>, vector<8x512xf32>
      tpu.vector_store %arg4[%c0_9, %c0_10], %12 {strides = array<i32>} : memref<8x512xf32, #tpu.memory_space<vmem>>, vector<8x512xf32>,
    } else {
    }
    %c0 = arith.constant 0 : index
    %c0_1 = arith.constant 0 : index
    %3 = vector.load %arg2[%c0, %c0_1] : memref<16x512xf32, #tpu.memory_space<vmem>>, vector<16x512xf32>
    %c0_2 = arith.constant 0 : index
    %c0_3 = arith.constant 0 : index
    %4 = vector.load %arg3[%c0_2, %c0_3] : memref<16x512xf32, #tpu.memory_space<vmem>>, vector<16x512xf32>
    %5 = arith.subf %3, %4 : vector<16x512xf32>
    %6 = arith.mulf %5, %5 : vector<16x512xf32>
    %c0_4 = arith.constant 0 : index
    %c0_5 = arith.constant 0 : index
    %7 = vector.load %arg4[%c0_4, %c0_5] : memref<8x512xf32, #tpu.memory_space<vmem>>, vector<8x512xf32>
    %8 = vector.shape_cast %6 : vector<16x512xf32> to vector<2x8x512xf32>
    %cst = arith.constant dense<0.000000e+00> : vector<8x512xf32>
    %9 = vector.multi_reduction <add>, %8, %cst [0] : vector<2x8x512xf32> to vector<8x512xf32>
    %10 = arith.addf %7, %9 : vector<8x512xf32>
    %c0_6 = arith.constant 0 : index
    %c0_7 = arith.constant 0 : index
    %11 = vector.load %arg4[%c0_6, %c0_7] : memref<8x512xf32, #tpu.memory_space<vmem>>, vector<8x512xf32>
    tpu.vector_store %arg4[%c0_6, %c0_7], %10 {strides = array<i32>} : memref<8x512xf32, #tpu.memory_space<vmem>>, vector<8x512xf32>,
    return
  }
  func.func @transform_0(%arg0: i32, %arg1: i32) -> (i32, i32) {
    %c0_i32 = arith.constant 0 : i32
    %c0_i32_0 = arith.constant 0 : i32
    return %arg1, %c0_i32 : i32, i32
  }
  func.func @transform_1(%arg0: i32, %arg1: i32) -> (i32, i32) {
    %c0_i32 = arith.constant 0 : i32
    %c0_i32_0 = arith.constant 0 : i32
    return %arg1, %c0_i32 : i32, i32
  }
  func.func @transform_2(%arg0: i32, %arg1: i32) -> (i32, i32) {
    %c0_i32 = arith.constant 0 : i32
    %c0_i32_0 = arith.constant 0 : i32
    return %arg0, %c0_i32 : i32, i32
  }
}

</mosaic_0001>

<bundles_post_ra>
// kernel: tpu_custom_call.1
= control target key start
LH: loop header
LB: loop body
LE: loop exit
PB: predicated region body
PF: predicated region fallthrough
CT: control target
= control target key end

     0   :  { %7 = vsyncpa [#allocation3], 0  ;;  %s231_s0 = inlined_call_operand.hbm [shape: f32[16,512], index: 0, kind: input, shape index: {}]   ;;  %s232_s1 = inlined_call_operand.hbm [shape: f32[16,512], index: 1, kind: input, shape index: {}]   ;;  %s233_s2 = inlined_call_operand.hbm [shape: f32[8,512], index: 2, kind: output, shape index: {}]  }
   0x1   :  { %8 = vsyncpa [#allocation6], 0 }
   0x2   :  { %9 = vsyncpa [#allocation4], 0  ;;  %s14_s11 = sshll.u32 %s231_s0, 4  ;;  %s202_s12 = smov [#allocation2]   ;;  %s15_s11 = int_to_ptr.hbm [resolvable:$true] %s14_s11 }
   0x3   :  { %s16_s13 = sshll.u32 %s202_s12, 4  ;;  %s27_s16 = sshll.u32 %s232_s1, 4  ;;  %s17_s13 = int_to_ptr.vmem [resolvable:$true] %s16_s13  ;;  %s28_s16 = int_to_ptr.hbm [resolvable:$true] %s27_s16 }
   0x4   :  { %s203_s17 = smov 512   ;;  %s204_s18 = smov 32  }
   0x5   :  { %22 = dma.hbm_to_vmem [thread:$0]  %s15_s11, 1024, %s17_s13, [#allocation3], %s203_s17, %s203_s17, %s204_s18  }
   0x6   :  { %s205_s19 = smov [#allocation5]  }
   0x7   :  { %s29_s20 = sshll.u32 %s205_s19, 4  ;;  %s30_s20 = int_to_ptr.vmem [resolvable:$true] %s29_s20 }
   0x8   :  { %35 = dma.hbm_to_vmem [thread:$0]  %s28_s16, 1024, %s30_s20, [#allocation6], %s203_s17, %s203_s17, %s204_s18  }
   0x9   :  { %196 = dma.done.wait [#allocation3], 1024  }
   0xa   :  { %197 = vsyncadd [#allocation3], 4294966272 }
   0xb   :  { %198 = dma.done.wait [#allocation6], 1024  }
   0xc   :  { %199 = vsyncadd [#allocation6], 4294966272  ;;  %v52_v0 = vld [vmem:[#allocation2] sm:$0xff]  ;;  %v53_v5 = vld [vmem:[#allocation2 + $0x8] sm:$0xff]  ;;  %s206_s0 = smov [#allocation7]   ;;  %s107_s23 = sshll.u32 %s233_s2, 4  ;;  %s108_s23 = int_to_ptr.hbm [resolvable:$true] %s107_s23 }
   0xd   :  { %v56_v1 = vld [vmem:[#allocation2 + $0x20] sm:$0xff]  ;;  %v57_v6 = vld [vmem:[#allocation2 + $0x28] sm:$0xff]  ;;  %v54_v10 = vld [vmem:[#allocation2 + $0x10] sm:$0xff]  ;;  %s105_s1 = sshll.u32 %s206_s0, 4  ;;  %s106_s1 = int_to_ptr.vmem [resolvable:$true] %s105_s1 }
   0xe   :  { %v60_v2 = vld [vmem:[#allocation5] sm:$0xff]  ;;  %v61_v8 = vld [vmem:[#allocation5 + $0x8] sm:$0xff]  ;;  %v58_v14 = vld [vmem:[#allocation2 + $0x30] sm:$0xff] }
   0xf   :  { %v64_v3 = vld [vmem:[#allocation5 + $0x20] sm:$0xff]  ;;  %v68_v4 = vsub.f32 %v52_v0, %v60_v2  ;;  %v65_v9 = vld [vmem:[#allocation5 + $0x28] sm:$0xff]  ;;  %v69_v12 = vsub.f32 %v53_v5, %v61_v8  ;;  %v62_v15 = vld [vmem:[#allocation5 + $0x10] sm:$0xff] }
  0x10   :  { %v72_v7 = vsub.f32 %v56_v1, %v64_v3  ;;  %v73_v13 = vsub.f32 %v57_v6, %v65_v9  ;;  %v66_v16 = vld [vmem:[#allocation5 + $0x30] sm:$0xff]  ;;  %v70_v18 = vsub.f32 %v54_v10, %v62_v15  ;;  %v55_v20 = vld [vmem:[#allocation2 + $0x18] sm:$0xff] }
  0x11   :  { %v76_v11 = vmul.f32 %v68_v4, %v68_v4  ;;  %v74_v19 = vsub.f32 %v58_v14, %v66_v16  ;;  %v59_v21 = vld [vmem:[#allocation2 + $0x38] sm:$0xff]  ;;  %v77_v23 = vmul.f32 %v69_v12, %v69_v12 }
  0x12   :  { %v80_v17 = vmul.f32 %v72_v7, %v72_v7  ;;  %v63_v22 = vld [vmem:[#allocation5 + $0x18] sm:$0xff]  ;;  %v81_v24 = vmul.f32 %v73_v13, %v73_v13  ;;  %v78_v28 = vmul.f32 %v70_v18, %v70_v18 }
  0x13   :  { %v67_v25 = vld [vmem:[#allocation5 + $0x38] sm:$0xff]  ;;  %v71_v26 = vsub.f32 %v55_v20, %v63_v22  ;;  %v82_v29 = vmul.f32 %v74_v19, %v74_v19 }
  0x14   :  { %v88_v27 = vadd.f32 %v80_v17, %v76_v11  ;;  %v75_v30 = vsub.f32 %v59_v21, %v67_v25  ;;  %v89_v31 = vadd.f32 %v81_v24, %v77_v23 }
  0x15   :  { %v79_v32 = vmul.f32 %v71_v26, %v71_v26  ;;  %v90_v33 = vadd.f32 %v82_v29, %v78_v28 }
  0x16   :  { %v83_v34 = vmul.f32 %v75_v30, %v75_v30  ;;  %96 = vst [vmem:[#allocation7] sm:$0xff] %v88_v27 }
  0x17   :  { %97 = vst [vmem:[#allocation7 + $0x8] sm:$0xff] %v89_v31 }
  0x18   :  { %v91_v35 = vadd.f32 %v83_v34, %v79_v32  ;;  %98 = vst [vmem:[#allocation7 + $0x10] sm:$0xff] %v90_v33 }
  0x1a   :  { %99 = vst [vmem:[#allocation7 + $0x18] sm:$0xff] %v91_v35 }
  0x1b   :  { %110 = dma.vmem_to_hbm [thread:$0]  %s106_s1, 512, %s108_s23, [#allocation4]  }
  0x1c   :  { %200 = dma.done.wait [#allocation4], 512  }
  0x1d   :  { %201 = vsyncadd [#allocation4], 4294966784 }
  0x1e   :  { %115 = vsyncpa [#allocation3], 1 }
  0x1f   :  { %116 = vsyncpa [#allocation6], 1 }
  0x20   :  { %117 = vsyncpa [#allocation4], 1 }

</bundles_post_ra>
